<compile_context>
chip_gen: v5e
topology: v5e:2x2
jax: 0.10.0
libtpu: 0.0.40
codegen_flags: <defaults>
</compile_context>

<pallas_src>
import functools

import jax
import jax.numpy as jnp
from jax.experimental import pallas as pl
from jax.experimental.pallas import tpu as pltpu


def _linear_embedding_kernel(x_ref, o_ref, *, factor: float):
    # Single elementwise VPU multiply per tile; `factor` is a compile-time
    # immediate (Python float), not a traced constant.
    o_ref[...] = x_ref[...] * factor


def _round_up(x: int, m: int) -> int:
    return ((x + m - 1) // m) * m


def linear_embedding(x: jax.Array, size: int, scale: float = 1.0) -> jax.Array:
    """Pallas equivalent of LinearEmbedding.forward.

    Args:
      x: float32 array of shape [batch, seq].
      size: the `size` attribute of the module.
      scale: the `scale` attribute of the module.

    Returns:
      float32 array of shape [batch, seq, 1].

    Note: for tiny inputs a standalone pallas_call is pure launch overhead;
    this pays off when [batch, seq] is many MiB (HBM-bandwidth-bound stream).
    """
    assert x.ndim == 2, "layout: expected [batch, seq]"
    assert x.dtype == jnp.float32, "tile rounding below assumes f32 (8,128) min tile"
    b, s = x.shape
    total = b * s
    factor = float(scale) / float(size)

    # --- Flatten to a lane-dense, contiguous slab [R, L] when possible. ----
    L = 0
    for cand in (2048, 1024, 512, 256, 128):
        if total % cand == 0:
            L = cand
            break
    if L:
        x2 = x.reshape(total // L, L)  # free metadata reshape (contiguous f32)
    else:
        # Fallback: keep [batch, seq]; full-row tiles keep each DMA contiguous.
        x2 = x
        L = s
    R = x2.shape[0]

    # --- Tile rows: full width, ~4 MiB f32 per tile. ------------------------
    target_elems = (4 << 20) // 4  # 1M f32 elements per tile
    tm = min(_round_up(R, 8), max(8, _round_up(max(1, target_elems // L), 8)))

    # Ensure >= 2 grid steps along the parallel axis so both TensorCores
    # stream on v7x (harmless elsewhere), when there are enough rows.
    if pl.cdiv(R, tm) < 2 and R >= 16:
        tm = _round_up(pl.cdiv(R, 2), 8)

    grid = (pl.cdiv(R, tm),)

    kernel = functools.partial(_linear_embedding_kernel, factor=factor)

    y = pl.pallas_call(
        kernel,
        out_shape=jax.ShapeDtypeStruct((R, L), x.dtype),
        grid=grid,
        in_specs=[pl.BlockSpec((tm, L), lambda i: (i, 0))],
        out_specs=pl.BlockSpec((tm, L), lambda i: (i, 0)),
        compiler_params=pltpu.CompilerParams(
            dimension_semantics=("parallel",),
            # Explicit scoped-VMEM budget: 2 x (in + out) x 4 MiB = 16 MiB fits
            # with headroom on every generation (v5e default is only 16 MiB).
            vmem_limit_bytes=32 << 20,
        ),
    )(x2)

    # Undo the flatten and apply unsqueeze(-1): pure metadata reshapes in XLA,
    # kept outside the kernel so in-kernel stores stay lane-dense.
    return y.reshape(b, s)[..., None]


if __name__ == "__main__":
    # Deterministic small example consistent with a 1-D toy embedding:
    # batch=8 sequences of length 128 scalar "positions".
    key = jax.random.PRNGKey(0)
    batch, seq = 8, 128
    size, scale = 16, 2.0

    x = jax.random.uniform(key, (batch, seq), dtype=jnp.float32) * size

    out = linear_embedding(x, size=size, scale=scale)
    out = jax.block_until_ready(out)

    # Reference check against plain JAX semantics of the PyTorch module
    # (tolerance accounts for the ~1-ulp folded-multiply difference).
    ref = (x / size * scale)[..., None]
    assert out.shape == (batch, seq, 1), out.shape
    assert out.dtype == jnp.float32, out.dtype
    assert jnp.allclose(out, ref, atol=1e-6, rtol=1e-6), float(
        jnp.max(jnp.abs(out - ref))
    )

    print("KERNEL_OK")
</pallas_src>

<mosaic_0001>
module attributes {stable_mosaic.version = 11 : i64} {
  func.func @_linear_embedding_kernel(%arg0: i32, %arg1: memref<8x1024xf32, #tpu.memory_space<vmem>>, %arg2: memref<8x1024xf32, #tpu.memory_space<vmem>>) attributes {dimension_semantics = [#tpu.dimension_semantics<parallel>], iteration_bounds = array<i64: 1>, scalar_prefetch = 0 : i64, scratch_operands = 0 : i64, tpu.core_type = #tpu.core_type<tc>, window_params = [{transform_indices = @transform_0, window_bounds = array<i64: 8, 1024>}, {transform_indices = @transform_1, window_bounds = array<i64: 8, 1024>}]} {
    %c0 = arith.constant 0 : index
    %c0_0 = arith.constant 0 : index
    %0 = vector.load %arg1[%c0, %c0_0] : memref<8x1024xf32, #tpu.memory_space<vmem>>, vector<8x1024xf32>
    %cst = arith.constant 1.250000e-01 : f32
    %1 = vector.broadcast %cst : f32 to vector<8x1024xf32>
    %2 = arith.mulf %0, %1 : vector<8x1024xf32>
    %c0_1 = arith.constant 0 : index
    %c0_2 = arith.constant 0 : index
    %3 = vector.load %arg2[%c0_1, %c0_2] : memref<8x1024xf32, #tpu.memory_space<vmem>>, vector<8x1024xf32>
    tpu.vector_store %arg2[%c0_1, %c0_2], %2 {strides = array<i32>} : memref<8x1024xf32, #tpu.memory_space<vmem>>, vector<8x1024xf32>,
    return
  }
  func.func @transform_0(%arg0: i32) -> (i32, i32) {
    %c0_i32 = arith.constant 0 : i32
    %c0_i32_0 = arith.constant 0 : i32
    return %arg0, %c0_i32 : i32, i32
  }
  func.func @transform_1(%arg0: i32) -> (i32, i32) {
    %c0_i32 = arith.constant 0 : i32
    %c0_i32_0 = arith.constant 0 : i32
    return %arg0, %c0_i32 : i32, i32
  }
}

</mosaic_0001>

<bundles_post_ra>
// kernel: tpu_custom_call.1
= control target key start
LH: loop header
LB: loop body
LE: loop exit
PB: predicated region body
PF: predicated region fallthrough
CT: control target
= control target key end

     0   :  { %6 = vsyncpa [#allocation3], 0  ;;  %s150_s0 = inlined_call_operand.hbm [shape: f32[1,1024], index: 0, kind: input, shape index: {}]   ;;  %s151_s1 = inlined_call_operand.hbm [shape: f32[1,1024], index: 1, kind: output, shape index: {}]  }
   0x1   :  { %7 = vsyncpa [#allocation4], 0 }
   0x2   :  { %11 = vsyncadd [#allocation3], 896  ;;  %s12_s8 = sshll.u32 %s150_s0, 4  ;;  %s124_s9 = smov [#allocation2]   ;;  %s13_s8 = int_to_ptr.hbm [resolvable:$true] %s12_s8 }
   0x3   :  { %s14_s10 = sshll.u32 %s124_s9, 4  ;;  %s125_s11 = smov 128   ;;  %s15_s10 = int_to_ptr.vmem [resolvable:$true] %s14_s10 }
   0x4   :  { %s126_s12 = smov 8  }
   0x5   :  { %20 = dma.hbm_to_vmem [thread:$0]  %s13_s8, 128, %s15_s10, [#allocation3], %s125_s11, %s125_s11, %s126_s12  }
   0x6   :  { %120 = dma.done.wait [#allocation3], 1024  }
   0x7   :  { %121 = vsyncadd [#allocation3], 4294966272  ;;  %v25_v0 = vld [vmem:[#allocation2] sm:$0xff]  ;;  %v26_v1 = vld [vmem:[#allocation2 + $0x8] sm:$0xff] }
   0x8   :  { %v27_v2 = vld [vmem:[#allocation2 + $0x10] sm:$0xff]  ;;  %v33_v3 = vmul.f32 0.125, %v25_v0  ;;  %v34_v4 = vmul.f32 0.125, %v26_v1  ;;  %v28_v6 = vld [vmem:[#allocation2 + $0x18] sm:$0xff]  ;;  %v29_v7 = vld [vmem:[#allocation2 + $0x20] sm:$0xff] }
   0x9   :  { %v35_v5 = vmul.f32 0.125, %v27_v2  ;;  %v30_v8 = vld [vmem:[#allocation2 + $0x28] sm:$0xff]  ;;  %v36_v9 = vmul.f32 0.125, %v28_v6  ;;  %v31_v10 = vld [vmem:[#allocation2 + $0x30] sm:$0xff]  ;;  %v37_v11 = vmul.f32 0.125, %v29_v7  ;;  %v32_v12 = vld [vmem:[#allocation2 + $0x38] sm:$0xff] }
   0xa   :  { %41 = vst [vmem:[#allocation5] sm:$0xff] %v33_v3  ;;  %v38_v13 = vmul.f32 0.125, %v30_v8  ;;  %v39_v14 = vmul.f32 0.125, %v31_v10  ;;  %v40_v15 = vmul.f32 0.125, %v32_v12 }
   0xb   :  { %42 = vst [vmem:[#allocation5 + $0x8] sm:$0xff] %v34_v4 }
   0xc   :  { %43 = vst [vmem:[#allocation5 + $0x10] sm:$0xff] %v35_v5 }
   0xd   :  { %44 = vst [vmem:[#allocation5 + $0x18] sm:$0xff] %v36_v9 }
   0xe   :  { %45 = vst [vmem:[#allocation5 + $0x20] sm:$0xff] %v37_v11 }
   0xf   :  { %46 = vst [vmem:[#allocation5 + $0x28] sm:$0xff] %v38_v13 }
  0x10   :  { %47 = vst [vmem:[#allocation5 + $0x30] sm:$0xff] %v39_v14 }
  0x11   :  { %48 = vst [vmem:[#allocation5 + $0x38] sm:$0xff] %v40_v15 }
  0x12   :  { %52 = vsyncadd [#allocation4], 896  ;;  %s55_s14 = sshll.u32 %s151_s1, 4  ;;  %s127_s15 = smov [#allocation5]   ;;  %s56_s14 = int_to_ptr.hbm [resolvable:$true] %s55_s14 }
  0x13   :  { %s53_s16 = sshll.u32 %s127_s15, 4  ;;  %s54_s16 = int_to_ptr.vmem [resolvable:$true] %s53_s16 }
  0x14   :  { %61 = dma.vmem_to_hbm [thread:$0]  %s54_s16, 128, %s56_s14, [#allocation4], %s125_s11, %s125_s11, %s126_s12  }
  0x15   :  { %122 = dma.done.wait [#allocation4], 1024  }
  0x16   :  { %123 = vsyncadd [#allocation4], 4294966272 }
  0x17   :  { %66 = vsyncpa [#allocation3], 1 }
  0x18   :  { %67 = vsyncpa [#allocation4], 1 }

</bundles_post_ra>
